<compile_context>
chip_gen: v7x
topology: tpu7x:2x2x1
jax: 0.10.0
libtpu: 0.0.40
codegen_flags: <defaults>
</compile_context>

<pallas_src>
import functools
import math

import jax
import jax.numpy as jnp
from jax import lax
from jax.experimental import pallas as pl
from jax.experimental.pallas import tpu as pltpu

LANES = 128
SUBLANES = 8


def _detect_num_tensorcores():
    """2 for v7x-class chips (2 TensorCores / chip), else 1 (v5e/v6e)."""
    try:
        kind = jax.devices()[0].device_kind.lower()
    except Exception:
        return 1
    return 2 if "v7" in kind else 1


def _round_up(v, m):
    return ((v + m - 1) // m) * m


def _dice_kernel(x_ref, t_ref, out_ref, *, rows, block_rows, blocks_per_core,
                 logit_thr, p, need_mask, first_masked_block):
    c = pl.program_id(0)   # core / parallel axis
    j = pl.program_id(1)   # reduction axis (blocks handled by this core)

    # Zero this core's resident partial-sum block on its first inner step.
    @pl.when(j == 0)
    def _():
        out_ref[...] = jnp.zeros_like(out_ref)

    x = x_ref[...].astype(jnp.float32)
    t_raw = t_ref[...]

    def fold(v):
        # (block_rows, 128) -> (8, 128): regroups whole native (8,128) tiles,
        # so the reshape is layout-preserving; the sum is plain VALU adds.
        return v.reshape(-1, SUBLANES, LANES).sum(axis=0)

    def accumulate(valid):
        # sigmoid(x) > thr  <=>  x > logit(thr)  (monotonic; no EUP work).
        pred_bool = x > logit_thr
        t = t_raw.astype(jnp.float32)
        if valid is not None:
            # Mask BEFORE forming inter / t_pow so garbage (even NaN) from a
            # past-the-edge block read cannot leak into the sums.
            pred_bool = jnp.logical_and(pred_bool, valid)
            t = jnp.where(valid, t, 0.0)
        pred = pred_bool.astype(jnp.float32)
        inter = jnp.where(pred_bool, t, 0.0)   # pred * t without the multiply
        if p == 2:
            t_pow = t * t
        elif p == 1:
            t_pow = t
        else:
            t_pow = t ** p
        # pred is {0,1}: sum(pred**p) == sum(pred) for p > 0.
        out_ref[0, 0] += fold(inter)
        out_ref[0, 1] += fold(pred)
        out_ref[0, 2] += fold(t_pow)

    if not need_mask:
        accumulate(None)
    else:
        # Only the last real block (if ragged) and clamped/duplicated overflow
        # blocks need the row mask; interior blocks take the mask-free path.
        b = c * blocks_per_core + j            # logical (unclamped) block id

        @pl.when(b < first_masked_block)
        def _():
            accumulate(None)

        @pl.when(b >= first_masked_block)
        def _():
            row_ids = b * block_rows + lax.broadcasted_iota(
                jnp.int32, x.shape, 0)
            accumulate(row_ids < rows)


def dice_loss(logits, target, *, smooth=1e-6, p=2, threshold=0.7,
              block_rows=8192, num_cores=None):
    """Pallas implementation of DiceLoss.forward(input=logits, target=target)."""
    assert logits.shape == target.shape, "Input and target must have the same size"

    if num_cores is None:
        num_cores = _detect_num_tensorcores()

    logit_thr = float(math.log(threshold / (1.0 - threshold)))

    n = logits.size
    x = jnp.ravel(logits)     # free bitcast, no HBM pass
    t = jnp.ravel(target)

    rows = n // LANES
    tail = n % LANES

    # Ragged (<128 element) lane tail: tiny plain-JAX reduce added to the
    # kernel's partial sums -- no full-array jnp.pad copy.
    # TODO(synk): a fully zero-copy ragged path (the prefix slice below still
    # costs one copy when tail != 0) would need manual DMA / 1-D blocks.
    tail_sums = None
    if tail:
        x_tail = lax.slice(x, (rows * LANES,), (n,)).astype(jnp.float32)
        t_tail = lax.slice(t, (rows * LANES,), (n,)).astype(jnp.float32)
        pred_tail = (x_tail > logit_thr).astype(jnp.float32)
        tail_sums = (jnp.sum(pred_tail * t_tail),
                     jnp.sum(pred_tail),
                     jnp.sum(t_tail ** p))
        if rows:
            x = lax.slice(x, (0,), (rows * LANES,))
            t = lax.slice(t, (0,), (rows * LANES,))

    if rows == 0:   # degenerate tiny input (< 128 elements)
        intersection, p_sum, t_sum = tail_sums
        union = p_sum + t_sum + smooth
        return 1.0 - 2.0 * intersection / union

    x2 = x.reshape(rows, LANES)   # free bitcast when tail == 0
    t2 = t.reshape(rows, LANES)

    # Tile rows: multiple of 8 sublanes, shrunk for small inputs.
    rows8 = _round_up(rows, SUBLANES)
    block_rows = min(_round_up(block_rows, SUBLANES), rows8)

    num_blocks = pl.cdiv(rows, block_rows)
    blocks_per_core = pl.cdiv(num_blocks, num_cores)
    total_blocks = num_cores * blocks_per_core
    # Blocks with logical id >= first_masked_block may read rows past `rows`
    # (ragged last block or clamped duplicates) and take the masked path.
    first_masked_block = num_blocks - 1 if rows % block_rows else num_blocks
    need_mask = first_masked_block < total_blocks

    def in_index_map(c, j):
        b = c * blocks_per_core + j
        # Clamp so the DMA never addresses past the array; duplicated reads
        # are zeroed by the in-kernel row mask.
        return (jnp.minimum(b, num_blocks - 1), 0)

    kernel = functools.partial(
        _dice_kernel,
        rows=rows, block_rows=block_rows, blocks_per_core=blocks_per_core,
        logit_thr=logit_thr, p=p, need_mask=need_mask,
        first_masked_block=first_masked_block,
    )

    core_sem = ("arbitrary" if num_cores == 1
                else getattr(pltpu, "CORE_PARALLEL", "parallel"))

    partials = pl.pallas_call(
        kernel,
        out_shape=jax.ShapeDtypeStruct((num_cores, 3, SUBLANES, LANES),
                                       jnp.float32),
        grid_spec=pltpu.PrefetchScalarGridSpec(
            num_scalar_prefetch=0,
            grid=(num_cores, blocks_per_core),
            in_specs=[
                pl.BlockSpec((block_rows, LANES), in_index_map),
                pl.BlockSpec((block_rows, LANES), in_index_map),
            ],
            out_specs=pl.BlockSpec((1, 3, SUBLANES, LANES),
                                   lambda c, j: (c, 0, 0, 0)),
        ),
        compiler_params=pltpu.CompilerParams(
            dimension_semantics=(core_sem, "arbitrary"),
            vmem_limit_bytes=32 * 1024 * 1024,
        ),
    )(x2, t2)

    # Tiny final combine (num_cores * 3 * 8 * 128 floats) in plain JAX.
    intersection = jnp.sum(partials[:, 0])
    p_sum = jnp.sum(partials[:, 1])
    t_sum = jnp.sum(partials[:, 2])
    if tail_sums is not None:
        intersection = intersection + tail_sums[0]
        p_sum = p_sum + tail_sums[1]
        t_sum = t_sum + tail_sums[2]
    union = p_sum + t_sum + smooth
    return 1.0 - 2.0 * intersection / union


def _dice_loss_ref(logits, target, smooth=1e-6, p=2, threshold=0.7):
    pred = (jax.nn.sigmoid(logits) > threshold).astype(jnp.float32).reshape(-1)
    tgt = target.astype(jnp.float32).reshape(-1)
    intersection = jnp.sum(pred * tgt)
    union = jnp.sum(pred ** p) + jnp.sum(tgt ** p) + smooth
    return 1.0 - 2.0 * intersection / union


if __name__ == "__main__":
    key = jax.random.PRNGKey(0)

    # Case 1: small NCHW segmentation head output (numel multiple of 128).
    k1, k2, k3, k4 = jax.random.split(key, 4)
    shape1 = (2, 4, 16, 16)
    logits1 = jax.random.normal(k1, shape1, dtype=jnp.float32) * 2.0
    target1 = (jax.random.uniform(k2, shape1) > 0.5).astype(jnp.float32)

    loss1 = jax.block_until_ready(dice_loss(logits1, target1))
    ref1 = _dice_loss_ref(logits1, target1)
    assert jnp.allclose(loss1, ref1, atol=1e-5, rtol=1e-5), (loss1, ref1)

    # Case 2: multi-block grid with a ragged last block (exercises the
    # pl.when-gated mask path and cross-step accumulation).
    shape2 = (4, 4, 40, 40)   # numel = 25600 -> 200 rows of 128
    logits2 = jax.random.normal(k3, shape2, dtype=jnp.float32) * 2.0
    target2 = (jax.random.uniform(k4, shape2) > 0.5).astype(jnp.float32)

    loss2 = jax.block_until_ready(dice_loss(logits2, target2, block_rows=64))
    ref2 = _dice_loss_ref(logits2, target2)
    assert jnp.allclose(loss2, ref2, atol=1e-5, rtol=1e-5), (loss2, ref2)

    print("KERNEL_OK")
</pallas_src>

<mosaic_0001>
module attributes {stable_mosaic.version = 11 : i64} {
  func.func @_dice_kernel(%arg0: i32, %arg1: i32, %arg2: memref<16x128xf32, #tpu.memory_space<vmem>>, %arg3: memref<16x128xf32, #tpu.memory_space<vmem>>, %arg4: memref<1x3x8x128xf32, #tpu.memory_space<vmem>>) attributes {dimension_semantics = [#tpu.dimension_semantics<arbitrary>, #tpu.dimension_semantics<arbitrary>], iteration_bounds = array<i64: 1, 1>, scalar_prefetch = 0 : i64, scratch_operands = 0 : i64, tpu.core_type = #tpu.core_type<tc>, window_params = [{transform_indices = @transform_0, window_bounds = array<i64: 16, 128>}, {transform_indices = @transform_1, window_bounds = array<i64: 16, 128>}, {transform_indices = @transform_2, window_bounds = array<i64: 1, 3, 8, 128>}]} {
    %c0_i32 = arith.constant 0 : i32
    %0 = arith.cmpi eq, %arg1, %c0_i32 : i32
    %1 = arith.extui %0 : i1 to i32
    %c0_i32_0 = arith.constant 0 : i32
    %2 = arith.cmpi ne, %1, %c0_i32_0 : i32
    scf.if %2 {
      %cst_30 = arith.constant 0.000000e+00 : f32
      %36 = vector.broadcast %cst_30 : f32 to vector<1x3x8x128xf32>
      %c0_31 = arith.constant 0 : index
      %c0_32 = arith.constant 0 : index
      %c0_33 = arith.constant 0 : index
      %c0_34 = arith.constant 0 : index
      %37 = vector.load %arg4[%c0_31, %c0_32, %c0_33, %c0_34] : memref<1x3x8x128xf32, #tpu.memory_space<vmem>>, vector<1x3x8x128xf32>
      tpu.vector_store %arg4[%c0_31, %c0_32, %c0_33, %c0_34], %36 {strides = array<i32>} : memref<1x3x8x128xf32, #tpu.memory_space<vmem>>, vector<1x3x8x128xf32>,
    } else {
    }
    %c0 = arith.constant 0 : index
    %c0_1 = arith.constant 0 : index
    %3 = vector.load %arg2[%c0, %c0_1] : memref<16x128xf32, #tpu.memory_space<vmem>>, vector<16x128xf32>
    %c0_2 = arith.constant 0 : index
    %c0_3 = arith.constant 0 : index
    %4 = vector.load %arg3[%c0_2, %c0_3] : memref<16x128xf32, #tpu.memory_space<vmem>>, vector<16x128xf32>
    %cst = arith.constant 0.847297847 : f32
    %5 = vector.broadcast %cst : f32 to vector<16x128xf32>
    %6 = arith.cmpf ogt, %3, %5 : vector<16x128xf32>
    %7 = arith.extui %6 : vector<16x128xi1> to vector<16x128xi32>
    %8 = arith.sitofp %7 : vector<16x128xi32> to vector<16x128xf32>
    %cst_4 = arith.constant 0.000000e+00 : f32
    %9 = vector.broadcast %cst_4 : f32 to vector<16x128xf32>
    %10 = arith.select %6, %4, %9 : vector<16x128xi1>, vector<16x128xf32>
    %11 = arith.mulf %4, %4 : vector<16x128xf32>
    %c0_5 = arith.constant 0 : index
    %c0_6 = arith.constant 0 : index
    %c0_7 = arith.constant 0 : index
    %c0_8 = arith.constant 0 : index
    %12 = vector.load %arg4[%c0_5, %c0_6, %c0_7, %c0_8] : memref<1x3x8x128xf32, #tpu.memory_space<vmem>>, vector<1x1x8x128xf32>
    %13 = vector.shape_cast %12 : vector<1x1x8x128xf32> to vector<8x128xf32>
    %14 = vector.shape_cast %10 : vector<16x128xf32> to vector<2x8x128xf32>
    %cst_9 = arith.constant dense<0.000000e+00> : vector<8x128xf32>
    %15 = vector.multi_reduction <add>, %14, %cst_9 [0] : vector<2x8x128xf32> to vector<8x128xf32>
    %16 = arith.addf %13, %15 : vector<8x128xf32>
    %c0_10 = arith.constant 0 : index
    %c0_11 = arith.constant 0 : index
    %c0_12 = arith.constant 0 : index
    %c0_13 = arith.constant 0 : index
    %17 = vector.load %arg4[%c0_10, %c0_11, %c0_12, %c0_13] : memref<1x3x8x128xf32, #tpu.memory_space<vmem>>, vector<1x1x8x128xf32>
    %18 = vector.shape_cast %17 : vector<1x1x8x128xf32> to vector<8x128xf32>
    %19 = vector.shape_cast %16 : vector<8x128xf32> to vector<1x1x8x128xf32>
    tpu.vector_store %arg4[%c0_10, %c0_11, %c0_12, %c0_13], %19 {strides = array<i32>} : memref<1x3x8x128xf32, #tpu.memory_space<vmem>>, vector<1x1x8x128xf32>,
    %c0_14 = arith.constant 0 : index
    %c1 = arith.constant 1 : index
    %c0_15 = arith.constant 0 : index
    %c0_16 = arith.constant 0 : index
    %20 = vector.load %arg4[%c0_14, %c1, %c0_15, %c0_16] : memref<1x3x8x128xf32, #tpu.memory_space<vmem>>, vector<1x1x8x128xf32>
    %21 = vector.shape_cast %20 : vector<1x1x8x128xf32> to vector<8x128xf32>
    %22 = vector.shape_cast %8 : vector<16x128xf32> to vector<2x8x128xf32>
    %cst_17 = arith.constant dense<0.000000e+00> : vector<8x128xf32>
    %23 = vector.multi_reduction <add>, %22, %cst_17 [0] : vector<2x8x128xf32> to vector<8x128xf32>
    %24 = arith.addf %21, %23 : vector<8x128xf32>
    %c0_18 = arith.constant 0 : index
    %c1_19 = arith.constant 1 : index
    %c0_20 = arith.constant 0 : index
    %c0_21 = arith.constant 0 : index
    %25 = vector.load %arg4[%c0_18, %c1_19, %c0_20, %c0_21] : memref<1x3x8x128xf32, #tpu.memory_space<vmem>>, vector<1x1x8x128xf32>
    %26 = vector.shape_cast %25 : vector<1x1x8x128xf32> to vector<8x128xf32>
    %27 = vector.shape_cast %24 : vector<8x128xf32> to vector<1x1x8x128xf32>
    tpu.vector_store %arg4[%c0_18, %c1_19, %c0_20, %c0_21], %27 {strides = array<i32>} : memref<1x3x8x128xf32, #tpu.memory_space<vmem>>, vector<1x1x8x128xf32>,
    %c0_22 = arith.constant 0 : index
    %c2 = arith.constant 2 : index
    %c0_23 = arith.constant 0 : index
    %c0_24 = arith.constant 0 : index
    %28 = vector.load %arg4[%c0_22, %c2, %c0_23, %c0_24] : memref<1x3x8x128xf32, #tpu.memory_space<vmem>>, vector<1x1x8x128xf32>
    %29 = vector.shape_cast %28 : vector<1x1x8x128xf32> to vector<8x128xf32>
    %30 = vector.shape_cast %11 : vector<16x128xf32> to vector<2x8x128xf32>
    %cst_25 = arith.constant dense<0.000000e+00> : vector<8x128xf32>
    %31 = vector.multi_reduction <add>, %30, %cst_25 [0] : vector<2x8x128xf32> to vector<8x128xf32>
    %32 = arith.addf %29, %31 : vector<8x128xf32>
    %c0_26 = arith.constant 0 : index
    %c2_27 = arith.constant 2 : index
    %c0_28 = arith.constant 0 : index
    %c0_29 = arith.constant 0 : index
    %33 = vector.load %arg4[%c0_26, %c2_27, %c0_28, %c0_29] : memref<1x3x8x128xf32, #tpu.memory_space<vmem>>, vector<1x1x8x128xf32>
    %34 = vector.shape_cast %33 : vector<1x1x8x128xf32> to vector<8x128xf32>
    %35 = vector.shape_cast %32 : vector<8x128xf32> to vector<1x1x8x128xf32>
    tpu.vector_store %arg4[%c0_26, %c2_27, %c0_28, %c0_29], %35 {strides = array<i32>} : memref<1x3x8x128xf32, #tpu.memory_space<vmem>>, vector<1x1x8x128xf32>,
    return
  }
  func.func @transform_0(%arg0: i32, %arg1: i32) -> (i32, i32) {
    %c1_i32 = arith.constant 1 : i32
    %0 = arith.muli %arg0, %c1_i32 : i32
    %1 = arith.addi %0, %arg1 : i32
    %c0_i32 = arith.constant 0 : i32
    %2 = arith.minsi %1, %c0_i32 : i32
    %c0_i32_0 = arith.constant 0 : i32
    %c0_i32_1 = arith.constant 0 : i32
    return %2, %c0_i32_0 : i32, i32
  }
  func.func @transform_1(%arg0: i32, %arg1: i32) -> (i32, i32) {
    %c1_i32 = arith.constant 1 : i32
    %0 = arith.muli %arg0, %c1_i32 : i32
    %1 = arith.addi %0, %arg1 : i32
    %c0_i32 = arith.constant 0 : i32
    %2 = arith.minsi %1, %c0_i32 : i32
    %c0_i32_0 = arith.constant 0 : i32
    %c0_i32_1 = arith.constant 0 : i32
    return %2, %c0_i32_0 : i32, i32
  }
  func.func @transform_2(%arg0: i32, %arg1: i32) -> (i32, i32, i32, i32) {
    %c0_i32 = arith.constant 0 : i32
    %c0_i32_0 = arith.constant 0 : i32
    %c0_i32_1 = arith.constant 0 : i32
    %c0_i32_2 = arith.constant 0 : i32
    return %arg0, %c0_i32, %c0_i32_0, %c0_i32_1 : i32, i32, i32, i32
  }
}

</mosaic_0001>

<bundles_post_ra>
// kernel: tpu_custom_call.1
= control target key start
LH: loop header
LB: loop body
LE: loop exit
PB: predicated region body
PF: predicated region fallthrough
CT: control target
= control target key end

     0   :  { %7 = vsyncpa [#allocation3], 0  ;;  %s263_s0 = inlined_call_operand.hbm [shape: f32[16,128], index: 0, kind: input, shape index: {}]   ;;  %s264_s1 = inlined_call_operand.hbm [shape: f32[16,128], index: 1, kind: input, shape index: {}]   ;;  %s265_s2 = inlined_call_operand.hbm [shape: f32[1,3,8,128], index: 2, kind: output, shape index: {}]  }
   0x1   :  { %8 = vsyncpa [#allocation6], 0 }
   0x2   :  { %9 = vsyncpa [#allocation4], 0  ;;  %s197_s9 = smov [#allocation2]   ;;  %s125_s13 = scalar_lea.hbm %s263_s0, 256 }
   0x3   :  { %s21_s10 = sshll.u32 %s197_s9, 4  ;;  %p126_p0 = scmp.ne.s32.totalorder %s263_s0, %s125_s13  ;;  %s22_s10 = int_to_ptr.vmem [resolvable:$true] %s21_s10 }
   0x4   :  { %p129_p1 = scmp.lt.u32.totalorder %s125_s13, %s263_s0 }
   0x6   :  { %p131_p2 = pnand %p129_p1, %p126_p0 }
   0x8   :  { %134 = shalt.err (!%p131_p2)
}
   0x9   :  { %s135_s18 = scalar_lea.vmem %s22_s10, 256  ;;  %p140_p4 = scmp.lt.s32.totalorder %s22_s10, %s22_s10 }
   0xa   :  { %p136_p3 = scmp.ne.s32.totalorder %s22_s10, %s135_s18  ;;  %p141_p5 = scmp.lt.s32.totalorder %s135_s18, %s135_s18 }
   0xc   :  { %p142_p6 = por %p141_p5, %p140_p4 }
   0xe   :  { %p143_p7 = pnand %p142_p6, %p136_p3 }
  0x10   :  { %146 = shalt.err (!%p143_p7)
}
  0x11   :  { %s198_s19 = smov 128   ;;  %s199_s20 = smov 8  }
  0x12   :  { %27 = dma.hbm_to_vmem [thread:$0]  %s263_s0, 256, %s22_s10, [#allocation3], %s198_s19, %s198_s19, %s199_s20  }
  0x13   :  { %s200_s23 = smov [#allocation5]   ;;  %s147_s27 = scalar_lea.hbm %s264_s1, 256 }
  0x14   :  { %s39_s24 = sshll.u32 %s200_s23, 4  ;;  %p148_p8 = scmp.ne.s32.totalorder %s264_s1, %s147_s27  ;;  %s40_s24 = int_to_ptr.vmem [resolvable:$true] %s39_s24 }
  0x15   :  { %p151_p9 = scmp.lt.u32.totalorder %s147_s27, %s264_s1 }
  0x17   :  { %p153_p10 = pnand %p151_p9, %p148_p8 }
  0x19   :  { %156 = shalt.err (!%p153_p10)
}
  0x1a   :  { %s157_s4 = scalar_lea.vmem %s40_s24, 256  ;;  %p162_p12 = scmp.lt.s32.totalorder %s40_s24, %s40_s24 }
  0x1b   :  { %p158_p11 = scmp.ne.s32.totalorder %s40_s24, %s157_s4  ;;  %p163_p13 = scmp.lt.s32.totalorder %s157_s4, %s157_s4 }
  0x1d   :  { %p164_p0 = por %p163_p13, %p162_p12 }
  0x1f   :  { %p165_p1 = pnand %p164_p0, %p158_p11 }
  0x21   :  { %168 = shalt.err (!%p165_p1)
}
  0x22   :  { %45 = dma.hbm_to_vmem [thread:$0]  %s264_s1, 256, %s40_s24, [#allocation6], %s198_s19, %s198_s19, %s199_s20  }
  0x23   :  { %191 = dma.done.wait [#allocation3], 256  }
  0x24   :  { %192 = vsyncadd [#allocation3], 4294967040 }
  0x25   :  { %193 = dma.done.wait [#allocation6], 256  }
  0x26   :  { %194 = vsyncadd [#allocation6], 4294967040  ;;  %v67_v0 = vld [vmem:[#allocation2] sm:$0xff]  ;;  %v68_v1 = vld [vmem:[#allocation2 + $0x8] sm:$0xff]  ;;  %v201_v7 = vmov 0.0   ;;  %s202_s1 = smov [#allocation7]  }
  0x27   :  { %v69_v2 = vld [vmem:[#allocation5] sm:$0xff]  ;;  %v70_v3 = vld [vmem:[#allocation5 + $0x8] sm:$0xff]  ;;  %vm71_vm0 = vcmp.gt.f32.partialorder %v67_v0, 0.84729785  ;;  %vm72_vm1 = vcmp.gt.f32.partialorder %v68_v1, 0.84729785 }
  0x28   :  { %v79_v4 = vmul.f32 %v69_v2, %v69_v2  ;;  %v77_v5 = vsel %vm71_vm0, %v69_v2, 0.0  ;;  %v78_v6 = vsel %vm72_vm1, %v70_v3, 0.0  ;;  %v117_v8 = vsel %vm71_vm0, 1.0, %v201_v7  ;;  %s100_s6 = sshll.u32 %s202_s1, 4  ;;  %s101_s6 = int_to_ptr.vmem [resolvable:$true] %s100_s6 }
  0x29   :  { %v118_v9 = vsel %vm72_vm1, 1.0, %v201_v7  ;;  %v82_v10 = vadd.f32 %v78_v6, %v77_v5  ;;  %v80_v12 = vmul.f32 %v70_v3, %v70_v3  ;;  %s169_s7 = scalar_lea.vmem %s101_s6, 384  ;;  %p174_p3 = scmp.lt.s32.totalorder %s101_s6, %s101_s6 }
  0x2a   :  { %v87_v11 = vadd.f32 %v118_v9, %v117_v8  ;;  %p170_p2 = scmp.ne.s32.totalorder %s101_s6, %s169_s7  ;;  %p175_p4 = scmp.lt.s32.totalorder %s169_s7, %s169_s7 }
  0x2b   :  { %v92_v13 = vadd.f32 %v80_v12, %v79_v4  ;;  %84 = vst [vmem:[#allocation7] sm:$0xff] %v82_v10 }
  0x2c   :  { %89 = vst [vmem:[#allocation7 + $0x8] sm:$0xff] %v87_v11  ;;  %p176_p5 = por %p175_p4, %p174_p3 }
  0x2d   :  { %94 = vst [vmem:[#allocation7 + $0x10] sm:$0xff] %v92_v13 }
  0x2e   :  { %p177_p6 = pnand %p176_p5, %p170_p2 }
  0x30   :  { %180 = shalt.err (!%p177_p6)
}
  0x31   :  { %s181_s10 = scalar_lea.hbm %s265_s2, 384 }
  0x32   :  { %p182_p7 = scmp.ne.s32.totalorder %s265_s2, %s181_s10  ;;  %p185_p8 = scmp.lt.u32.totalorder %s181_s10, %s265_s2 }
  0x34   :  { %p187_p9 = pnand %p185_p8, %p182_p7 }
  0x36   :  { %190 = shalt.err (!%p187_p9)
}
  0x37   :  { %106 = dma.vmem_to_hbm [thread:$0]  %s101_s6, 384, %s265_s2, [#allocation4], %s198_s19, %s198_s19, %s199_s20  }
  0x38   :  { %195 = dma.done.wait [#allocation4], 384  }
  0x39   :  { %196 = vsyncadd [#allocation4], 4294966912 }
  0x3a   :  { %110 = vsyncpa [#allocation3], 1 }
  0x3b   :  { %111 = vsyncpa [#allocation6], 1 }
  0x3c   :  { %112 = vsyncpa [#allocation4], 1 }

</bundles_post_ra>
